<compile_context>
chip_gen: v7x
topology: tpu7x:2x2x1
jax: 0.10.0
libtpu: 0.0.40
codegen_flags: <defaults>
</compile_context>

<pallas_src>
import functools
import math

import numpy as np
import jax
import jax.numpy as jnp
from jax.experimental import pallas as pl
from jax.experimental.pallas import tpu as pltpu

POOL = 7                        # self.pooling_size
_COMPUTE_DTYPE = jnp.bfloat16   # MXU operand dtype (accumulation stays f32)
_MAX_TM = 2048                  # hard cap on rows per grid step


# ----------------------------------------------------------------------------
# roi_align(full-image box) -> static bilinear pooling matrix
# Exactly replicates torchvision.ops.roi_align with:
#   boxes = [0, 0, H, W] (x1, y1, x2, y2)  -- note the PyTorch code passes H as x2
#   spatial_scale=1.0, sampling_ratio=-1, aligned=False
# ----------------------------------------------------------------------------
def _axis_weights(axis_size: int, roi_extent: float, pooled: int) -> np.ndarray:
    """1-D bilinear sampling weights: (pooled, axis_size)."""
    bin_size = roi_extent / pooled
    grid = int(math.ceil(roi_extent / pooled))  # sampling_ratio=-1 => ceil
    wmat = np.zeros((pooled, axis_size), dtype=np.float64)
    for p in range(pooled):
        for i in range(grid):
            c = p * bin_size + (i + 0.5) * bin_size / grid  # roi_start = 0
            if c < -1.0 or c > axis_size:
                continue  # samples outside the image contribute 0
            if c < 0.0:
                c = 0.0
            lo = int(np.floor(c))
            if lo >= axis_size - 1:
                lo = axis_size - 1
                hi = lo
                c = float(lo)
            else:
                hi = lo + 1
            frac = c - lo
            wmat[p, lo] += 1.0 - frac
            wmat[p, hi] += frac
    return wmat / grid  # average over the sampling grid along this axis


@functools.lru_cache(maxsize=None)
def _pool_matrix_T(H: int, W: int, pooled: int = POOL) -> np.ndarray:
    """(H*W, pooled*pooled) f32 matrix M^T such that pooled = x_flat @ M^T."""
    # box = (x1, y1, x2, y2) = (0, 0, H, W) -> roi "height" extent = W over the
    # H axis, "width" extent = H over the W axis: bug-for-bug with the PyTorch
    # module (numerically identical to full-image pooling when H == W).
    a_y = _axis_weights(H, float(W), pooled)  # over image height axis (size H)
    a_x = _axis_weights(W, float(H), pooled)  # over image width  axis (size W)
    m = np.einsum("ph,qw->pqhw", a_y, a_x).reshape(pooled * pooled, H * W)
    return np.ascontiguousarray(m.T.astype(np.float32))


# ----------------------------------------------------------------------------
# Tile selection (generation-gated)
# ----------------------------------------------------------------------------
@functools.lru_cache(maxsize=1)
def _vmem_params():
    """(x_block_bytes, max_tk, vmem_limit) gated on physical VMEM capacity."""
    cap = 64 * 1024 * 1024
    try:
        cap = int(pltpu.get_tpu_info().vmem_capacity_bytes)
    except Exception:          # non-TPU / older jax: assume the smallest part
        pass
    if cap >= 100 * 1024 * 1024:            # v5e / v6e: 128 MiB physical VMEM
        return (10 << 20, 4096, 96 << 20)
    return (4 << 20, 2048, 48 << 20)         # v7x: 64 MiB physical VMEM


def _choose_tiles(n, hw, pp, x_itemsize, m_itemsize):
    x_block_bytes, max_tk, vmem_limit = _vmem_params()
    row_align = {4: 8, 2: 16, 1: 32}.get(x_itemsize, 8)

    # K tile: a multiple of 128 that exactly divides hw (a ragged K tile would
    # let padded-input garbage leak into the accumulation); else full extent.
    if hw > max_tk:
        tk = hw
        for cand in range(max_tk, 127, -128):
            if hw % cand == 0:
                tk = cand
                break
    else:
        tk = hw

    # Row tile: biggest aligned tile inside the per-block budget, after
    # reserving VMEM for the resident (double-buffered) M^T block plus slack
    # for the outputs / accumulators.  (2 inputs x 2 pipeline buffers.)
    # TODO(synk): pathological H*W with no multiple-of-128 divisor and a
    # resident M^T larger than the VMEM limit would need HBM-side K padding.
    m_bytes = 2 * hw * pp * m_itemsize
    avail = max(vmem_limit - m_bytes - (2 << 20), vmem_limit // 8)
    per_block = min(x_block_bytes, avail // 4)
    tm = per_block // (tk * x_itemsize)
    tm = max(row_align, (tm // row_align) * row_align)
    tm = min(tm, _MAX_TM)

    # Never collapse to a single row block when there is enough work to split:
    # >= 2 (up to 8) blocks keep the DMA/compute pipeline busy and let v7x
    # shard the 'parallel' axis across both TensorCores.
    if n > 64:
        desired = max(2, min(8, n // 256))
        cap = pl.cdiv(n, desired)
        cap = pl.cdiv(cap, row_align) * row_align
        tm = min(tm, max(cap, row_align))
    if tm >= n:
        tm = n  # single full-extent row block (small problems only)
    return tm, tk, vmem_limit


# ----------------------------------------------------------------------------
# Fused Pallas kernels: pooled_{s,q} = x_{s,q} @ M^T on the MXU
# ----------------------------------------------------------------------------
def _pool_pair_single_kernel(s_ref, q_ref, m_ref, so_ref, qo_ref, *,
                             compute_dtype):
    """Single K step: no accumulators, write the MXU result straight out."""
    m = m_ref[...]
    s = s_ref[...].astype(compute_dtype)
    q = q_ref[...].astype(compute_dtype)
    so_ref[...] = jnp.dot(s, m, preferred_element_type=jnp.float32).astype(so_ref.dtype)
    qo_ref[...] = jnp.dot(q, m, preferred_element_type=jnp.float32).astype(qo_ref.dtype)


def _pool_pair_ktiled_kernel(s_ref, q_ref, m_ref, so_ref, qo_ref, s_acc, q_acc,
                             *, tk, compute_dtype):
    """K-tiled path: f32 VMEM accumulators; resident M^T sliced per K step."""
    k = pl.program_id(1)

    @pl.when(k == 0)
    def _():
        s_acc[...] = jnp.zeros_like(s_acc)
        q_acc[...] = jnp.zeros_like(q_acc)

    off = pl.multiple_of(k * tk, 128)          # tk is always a multiple of 128
    m = m_ref[pl.ds(off, tk), :]
    s = s_ref[...].astype(compute_dtype)
    q = q_ref[...].astype(compute_dtype)
    s_acc[...] += jnp.dot(s, m, preferred_element_type=jnp.float32)
    q_acc[...] += jnp.dot(q, m, preferred_element_type=jnp.float32)

    @pl.when(k == pl.num_programs(1) - 1)
    def _():
        so_ref[...] = s_acc[...].astype(so_ref.dtype)
        qo_ref[...] = q_acc[...].astype(qo_ref.dtype)


@jax.jit
def _roi_pool_pair(s_flat, q_flat, m_t):
    """s_flat, q_flat: (N, H*W); m_t: (H*W, 49) -> two (N, 49) arrays."""
    n, hw = s_flat.shape
    pp = m_t.shape[1]
    out_dtype = s_flat.dtype
    compute_dtype = m_t.dtype
    x_item = s_flat.dtype.itemsize
    tm, tk, vmem_limit = _choose_tiles(n, hw, pp, x_item, m_t.dtype.itemsize)

    cost = pl.CostEstimate(
        flops=2 * 2 * n * hw * pp,
        transcendentals=0,
        bytes_accessed=(2 * n * hw * x_item
                        + hw * pp * m_t.dtype.itemsize
                        + 2 * n * pp * out_dtype.itemsize))
    out_shape = (jax.ShapeDtypeStruct((n, pp), out_dtype),
                 jax.ShapeDtypeStruct((n, pp), out_dtype))

    if tk == hw:
        # Common case: one K step.  1-D grid, no scratch, direct writeback.
        grid = (pl.cdiv(n, tm),)
        kernel = functools.partial(_pool_pair_single_kernel,
                                   compute_dtype=compute_dtype)
        x_spec = pl.BlockSpec((tm, hw), lambda i: (i, 0))
        m_spec = pl.BlockSpec((hw, pp), lambda i: (0, 0))      # resident, 1 DMA
        o_spec = pl.BlockSpec((tm, pp), lambda i: (i, 0))
        scratch = []
        dims = ("parallel",)
    else:
        # Very large feature maps: K-tiled f32 accumulation, M^T stays resident.
        grid = (pl.cdiv(n, tm), hw // tk)
        kernel = functools.partial(_pool_pair_ktiled_kernel,
                                   tk=tk, compute_dtype=compute_dtype)
        x_spec = pl.BlockSpec((tm, tk), lambda i, k: (i, k))
        m_spec = pl.BlockSpec((hw, pp), lambda i, k: (0, 0))   # resident, 1 DMA
        o_spec = pl.BlockSpec((tm, pp), lambda i, k: (i, 0))
        scratch = [pltpu.VMEM((tm, pp), jnp.float32),
                   pltpu.VMEM((tm, pp), jnp.float32)]
        dims = ("parallel", "arbitrary")

    return pl.pallas_call(
        kernel,
        out_shape=out_shape,
        grid=grid,
        in_specs=[x_spec, x_spec, m_spec],
        out_specs=(o_spec, o_spec),
        scratch_shapes=scratch,
        compiler_params=pltpu.CompilerParams(
            dimension_semantics=dims,
            vmem_limit_bytes=vmem_limit),
        cost_estimate=cost,
    )(s_flat, q_flat, m_t)


# ----------------------------------------------------------------------------
# POOLING.forward equivalent (align_first=True => reads *_p1, writes *_p2)
# ----------------------------------------------------------------------------
def pooling_forward(features: dict) -> dict:
    query_features = features["query_p1"]
    support_features = features["support_p1"]
    # support_targets are unused by the reference forward (the box is rebuilt
    # as the full image extent), so they are not needed here.
    support_pooled = []
    query_pooled = []
    for level, feat in enumerate(support_features):
        B, Ns, C, H, W = query_features[level].shape
        m_t = jnp.asarray(_pool_matrix_T(H, W, POOL)).astype(_COMPUTE_DTYPE)

        s_flat = feat.reshape(Ns * B * C, H * W)
        q_flat = query_features[level].reshape(B * Ns * C, H * W)

        s_out, q_out = _roi_pool_pair(s_flat, q_flat, m_t)
        support_pooled.append(s_out.reshape(Ns, B, C, POOL, POOL))
        query_pooled.append(q_out.reshape(B, Ns, C, POOL, POOL))

    features.update({"query_p2": query_pooled, "support_p2": support_pooled})
    return features


if __name__ == "__main__":
    # n = B*Ns*C = 120 > 64 -> two row blocks incl. a ragged (masked) tail;
    # hw = 256 -> single-K fast path.
    B, Ns, C, H, W = 2, 3, 20, 16, 16
    key = jax.random.PRNGKey(0)
    k_q, k_s = jax.random.split(key)
    query_p1 = [jax.random.normal(k_q, (B, Ns, C, H, W), dtype=jnp.float32)]
    support_p1 = [jax.random.normal(k_s, (Ns, B, C, H, W), dtype=jnp.float32)]

    feats = {
        "query_p1": query_p1,
        "support_p1": support_p1,
        "support_targets": None,  # unused by the forward pass
    }
    out = pooling_forward(feats)
    q_p2 = jax.block_until_ready(out["query_p2"][0])
    s_p2 = jax.block_until_ready(out["support_p2"][0])

    assert q_p2.shape == (B, Ns, C, POOL, POOL)
    assert s_p2.shape == (Ns, B, C, POOL, POOL)
    assert q_p2.dtype == jnp.float32 and s_p2.dtype == jnp.float32

    # Numerical check against a float64 host reference of the same linear map
    # (bf16 MXU operands -> tolerance is the module's stated accuracy budget).
    m_np = _pool_matrix_T(H, W, POOL).astype(np.float64)
    q_np = np.asarray(query_p1[0], dtype=np.float64).reshape(B * Ns * C, H * W)
    s_np = np.asarray(support_p1[0], dtype=np.float64).reshape(Ns * B * C, H * W)
    ref_q = (q_np @ m_np).reshape(B, Ns, C, POOL, POOL)
    ref_s = (s_np @ m_np).reshape(Ns, B, C, POOL, POOL)
    np.testing.assert_allclose(np.asarray(q_p2), ref_q, rtol=2e-2, atol=2e-2)
    np.testing.assert_allclose(np.asarray(s_p2), ref_s, rtol=2e-2, atol=2e-2)

    print("KERNEL_OK")
</pallas_src>

<mosaic_0001>
module attributes {stable_mosaic.version = 11 : i64} {
  func.func @_pool_pair_single_kernel(%arg0: i32, %arg1: memref<64x256xf32, #tpu.memory_space<vmem>>, %arg2: memref<64x256xf32, #tpu.memory_space<vmem>>, %arg3: memref<256x49xbf16, #tpu.memory_space<vmem>>, %arg4: memref<64x49xf32, #tpu.memory_space<vmem>>, %arg5: memref<64x49xf32, #tpu.memory_space<vmem>>) attributes {dimension_semantics = [#tpu.dimension_semantics<parallel>], iteration_bounds = array<i64: 2>, scalar_prefetch = 0 : i64, scratch_operands = 0 : i64, tpu.core_type = #tpu.core_type<tc>, window_params = [{transform_indices = @transform_0, window_bounds = array<i64: 64, 256>}, {transform_indices = @transform_1, window_bounds = array<i64: 64, 256>}, {pipeline_mode = #tpu.pipeline_mode<synchronous>, transform_indices = @transform_2, window_bounds = array<i64: 256, 49>}, {transform_indices = @transform_3, window_bounds = array<i64: 64, 49>}, {transform_indices = @transform_4, window_bounds = array<i64: 64, 49>}]} {
    %c0 = arith.constant 0 : index
    %c0_0 = arith.constant 0 : index
    %0 = vector.load %arg3[%c0, %c0_0] : memref<256x49xbf16, #tpu.memory_space<vmem>>, vector<256x49xbf16>
    %c0_1 = arith.constant 0 : index
    %c0_2 = arith.constant 0 : index
    %1 = vector.load %arg1[%c0_1, %c0_2] : memref<64x256xf32, #tpu.memory_space<vmem>>, vector<64x256xf32>
    %2 = arith.truncf %1 : vector<64x256xf32> to vector<64x256xbf16>
    %c0_3 = arith.constant 0 : index
    %c0_4 = arith.constant 0 : index
    %3 = vector.load %arg2[%c0_3, %c0_4] : memref<64x256xf32, #tpu.memory_space<vmem>>, vector<64x256xf32>
    %4 = arith.truncf %3 : vector<64x256xf32> to vector<64x256xbf16>
    %cst = arith.constant dense<0.000000e+00> : vector<64x49xf32>
    %5 = tpu.matmul %2, %0, %cst {dimension_numbers = #tpu.dot_dimension_numbers<[1], [0], [0], [1], [0, 0, 1, 1], [], []>} : vector<64x256xbf16>, vector<256x49xbf16>, vector<64x49xf32> -> vector<64x49xf32>
    %c0_5 = arith.constant 0 : index
    %c0_6 = arith.constant 0 : index
    %6 = vector.load %arg4[%c0_5, %c0_6] : memref<64x49xf32, #tpu.memory_space<vmem>>, vector<64x49xf32>
    tpu.vector_store %arg4[%c0_5, %c0_6], %5 {strides = array<i32>} : memref<64x49xf32, #tpu.memory_space<vmem>>, vector<64x49xf32>,
    %cst_7 = arith.constant dense<0.000000e+00> : vector<64x49xf32>
    %7 = tpu.matmul %4, %0, %cst_7 {dimension_numbers = #tpu.dot_dimension_numbers<[1], [0], [0], [1], [0, 0, 1, 1], [], []>} : vector<64x256xbf16>, vector<256x49xbf16>, vector<64x49xf32> -> vector<64x49xf32>
    %c0_8 = arith.constant 0 : index
    %c0_9 = arith.constant 0 : index
    %8 = vector.load %arg5[%c0_8, %c0_9] : memref<64x49xf32, #tpu.memory_space<vmem>>, vector<64x49xf32>
    tpu.vector_store %arg5[%c0_8, %c0_9], %7 {strides = array<i32>} : memref<64x49xf32, #tpu.memory_space<vmem>>, vector<64x49xf32>,
    return
  }
  func.func @transform_0(%arg0: i32) -> (i32, i32) {
    %c0_i32 = arith.constant 0 : i32
    %c0_i32_0 = arith.constant 0 : i32
    return %arg0, %c0_i32 : i32, i32
  }
  func.func @transform_1(%arg0: i32) -> (i32, i32) {
    %c0_i32 = arith.constant 0 : i32
    %c0_i32_0 = arith.constant 0 : i32
    return %arg0, %c0_i32 : i32, i32
  }
  func.func @transform_2(%arg0: i32) -> (i32, i32) {
    %c0_i32 = arith.constant 0 : i32
    %c0_i32_0 = arith.constant 0 : i32
    %c0_i32_1 = arith.constant 0 : i32
    return %c0_i32, %c0_i32_0 : i32, i32
  }
  func.func @transform_3(%arg0: i32) -> (i32, i32) {
    %c0_i32 = arith.constant 0 : i32
    %c0_i32_0 = arith.constant 0 : i32
    return %arg0, %c0_i32 : i32, i32
  }
  func.func @transform_4(%arg0: i32) -> (i32, i32) {
    %c0_i32 = arith.constant 0 : i32
    %c0_i32_0 = arith.constant 0 : i32
    return %arg0, %c0_i32 : i32, i32
  }
}

</mosaic_0001>

<bundles_post_ra>
// kernel: _roi_pool_pair.1
= control target key start
LH: loop header
LB: loop body
LE: loop exit
PB: predicated region body
PF: predicated region fallthrough
CT: control target
= control target key end

     0   :  { %10 = vsyncpa [#allocation3], 0  ;;  %s2110_s0 = inlined_call_operand.hbm [shape: f32[120,256], index: 0, kind: input, shape index: {}]   ;;  %s2111_s1 = inlined_call_operand.hbm [shape: f32[120,256], index: 1, kind: input, shape index: {}]   ;;  %s2112_s2 = inlined_call_operand.vmem [shape: bf16[256,49], index: 2, kind: input, shape index: {}]   ;;  %s2113_s3 = inlined_call_operand.vmem [shape: f32[120,49], index: 3, kind: output, shape index: {0}]   ;;  %s2114_s4 = inlined_call_operand.vmem [shape: f32[120,49], index: 4, kind: output, shape index: {1}]  }
   0x1   :  { %12 = vsyncpa [#allocation3 + $0x1], 0 }
   0x2   :  { %13 = vsyncpa [#allocation5], 0 }
   0x3   :  { %15 = vsyncpa [#allocation5 + $0x1], 0  ;;  %s1721_s15 = smov 0   ;;  %s1723_s16 = smov 0  }
   0x4   :  { %s1725_s17 = smov 0   ;;  %s1727_s18 = smov 0  }
   0x5 LB: > { %s1740_s19 = sadd.s32 4294967295, %s1624_s18   ;;  %s1743_s20 = sadd.s32 1, %s1624_s18   ;;  %s1624_s18 = sphi %s1727_s18, %s2129_s18   ;;  %s1620_s17 = sphi %s1725_s17, %s2128_s17   ;;  %s1616_s16 = sphi %s1723_s16, %s2127_s16   ;;  %s1612_s15 = sphi %s1721_s15, %s2126_s15  }
   0x6   : > { %s25_s21 = ssub.s32 %s1624_s18, %s1743_s20  ;;  %s28_s22 = sadd.s32 1, %s1620_s17 }
   0x7   : > { %p26_p0 = scmp.eq.s32.totalorder %s25_s21, 0  ;;  %p35_p1 = scmp.ne.s32.totalorder %s1620_s17, %s1616_s16 }
   0x8   : > { %p36_p2 = scmp.eq.s32.totalorder %s1624_s18, 0  ;;  %p41_p3 = scmp.ne.s32.totalorder %s1616_s16, %s1612_s15 }
   0x9   : > { %s1753_s23 = scalar_select %p26_p0, %s1620_s17, %s28_s22  }
   0xa   : > { %p1755_p4 = por %p36_p2, %p35_p1  ;;  %p42_p5 = scmp.eq.s32.totalorder %s1740_s19, 0 }
   0xb   : > { %p112_p6 = scmp.eq.s32.totalorder %s1740_s19, 1  ;;  %p1120_p9 = scmp.ge.s32.totalorder %s1624_s18, 2 }
   0xc   : > { %p1761_p7 = por %p42_p5, %p41_p3 }
   0xd   : > { %p1765_p8 = por %p112_p6, %p35_p1  ;;  %163 = sbr.rel (%p1120_p9) target bundleno = 90 (0x5a), region = 20 }
   0xf   : > { %s2117_s26 = scalar_select %p1765_p8, 1, 0 }
  0x14   : > { %166 = sbr.rel (!%p1755_p4) target bundleno = 55 (0x37), region = 24  ;;  %s167_s27 = sand.u32 (%p1755_p4), 1, %s1620_s17  }
  0x15   : > { %s1122_s28 = sshll.u32 (%p1755_p4), %s1624_s18, 3  ;;  %s1121_s29 = sshll.u32 (%p1755_p4), %s167_s27, 7 }
  0x16   : > { %s173_s30 = ssub.s32 (%p1755_p4), 15, %s1122_s28  ;;  %s1777_s7 = scalar_lea.sflag (%p1755_p4), [#allocation3], %s167_s27 }
  0x17   : > { %p174_p10 = scmp.lt.s32.totalorder (%p1755_p4), %s173_s30, 8  ;;  %s171_s8 = scalar_lea.vmem (%p1755_p4), [#allocation2], %s1121_s29 }
  0x1b   : > { %s2131_s30 = smov (!%p174_p10, %s173_s30), 8 }
  0x1c   : > { %s1774_s5 = sshll.u32 %s2131_s30, 8 }
  0x1d   : > { %s179_s6 = ssub.s32 2048, %s1774_s5 }
  0x1e   : > { %180 = vsyncadd %s1777_s7, %s179_s6  ;;  %p1125_p11 = scmp.ne.s32.totalorder %s1774_s5, 0  ;;  %s1194_s9 = sshll.u32 %s1624_s18, 11 }
  0x1f   : > { %s1785_s12 = scalar_lea.hbm %s2110_s0, %s1194_s9  ;;  %s186_s13 = sshll.u32 %s171_s8, 4  ;;  %s1787_s13 = int_to_ptr.vmem [resolvable:$true] %s186_s13 }
  0x20   : > { %s1466_s14 = scalar_lea.hbm %s1785_s12, %s1774_s5  ;;  %s1470_s22 = scalar_lea.hbm %s2110_s0, 3840 }
  0x21   : > { %p1467_p12 = scmp.ne.s32.totalorder %s1785_s12, %s1466_s14  ;;  %p1471_p1 = scmp.lt.u32.totalorder %s1785_s12, %s2110_s0 }
  0x22   : > { %p1472_p2 = scmp.lt.u32.totalorder %s1470_s22, %s1466_s14  ;;  %p1474_p5 = scmp.lt.u32.totalorder %s1466_s14, %s1785_s12 }
  0x23   : > { %p1468_p13 = pnand %p1467_p12, %p1125_p11 }
  0x24   : > { %p1473_p3 = por %p1472_p2, %p1471_p1 }
  0x25   : > { %p1469_p0 = pneg %p1468_p13 }
  0x26   : > { %p1475_p6 = por %p1474_p5, %p1473_p3 }
  0x28   : > { %p1476_p9 = pnand %p1475_p6, %p1469_p0 }
  0x2a   : > { %1479 = shalt.err (!%p1476_p9)
}
  0x2b   : > { %s1480_s29 = scalar_lea.vmem %s1787_s13, %s1774_s5  ;;  %s1690_s30 = smov [#allocation2]  }
  0x2c   : > { %p1481_p10 = scmp.ne.s32.totalorder %s1787_s13, %s1480_s29  ;;  %s1484_s6 = sshll.u32 %s1690_s30, 4  ;;  %s1485_s6 = int_to_ptr.vmem [resolvable:$false] %s1484_s6 }
  0x2d   : > { %s1486_s8 = scalar_lea.vmem %s1485_s6, 4096  ;;  %p1487_p8 = scmp.lt.s32.totalorder %s1787_s13, %s1485_s6 }
  0x2e   : > { %p1482_p12 = pnand %p1481_p10, %p1125_p11  ;;  %p1488_p1 = scmp.lt.s32.totalorder %s1486_s8, %s1480_s29 }
  0x30   : > { %p1483_p13 = pneg %p1482_p12  ;;  %p1489_p2 = por %p1488_p1, %p1487_p8 }
  0x32   : > { %p1490_p3 = pnand %p1489_p2, %p1483_p13 }
  0x34   : > { %1493 = shalt.err (!%p1490_p3)
}
  0x35   : > { %s1691_s9 = smov 256   ;;  %s1692_s10 = smov 16  }
  0x36   : > { %192 = dma.hbm_to_vmem [thread:$0]  (%p1125_p11), %s1785_s12, %s1774_s5, %s1787_s13, %s1777_s7, %s1691_s9, %s1691_s9, %s1692_s10  }
  0x37 PF: > { %195 = sbr.rel (!%p1755_p4) target bundleno = 90 (0x5a), region = 28  ;;  %s196_s11 = sand.u32 (%p1755_p4), 1, %s1620_s17  }
  0x38   : > { %s1131_s14 = sshll.u32 (%p1755_p4), %s1624_s18, 3  ;;  %s1130_s15 = sshll.u32 (%p1755_p4), %s196_s11, 7 }
  0x39   : > { %s202_s21 = ssub.s32 (%p1755_p4), 15, %s1131_s14  ;;  %s1821_s28 = scalar_lea.sflag (%p1755_p4), [#allocation5], %s196_s11 }
  0x3a   : > { %p203_p8 = scmp.lt.s32.totalorder (%p1755_p4), %s202_s21, 8  ;;  %s200_s5 = scalar_lea.vmem (%p1755_p4), [#allocation4], %s1130_s15 }
  0x3e   : > { %s2133_s21 = smov (!%p203_p8, %s202_s21), 8 }
  0x3f   : > { %s1818_s22 = sshll.u32 %s2133_s21, 8 }
  0x40   : > { %s208_s27 = ssub.s32 2048, %s1818_s22 }
  0x41   : > { %209 = vsyncadd %s1821_s28, %s208_s27  ;;  %p1134_p4 = scmp.ne.s32.totalorder %s1818_s22, 0  ;;  %s1197_s24 = sshll.u32 %s1624_s18, 11 }
  0x42   : > { %s1829_s13 = scalar_lea.hbm %s2111_s1, %s1197_s24  ;;  %s215_s29 = sshll.u32 %s200_s5, 4  ;;  %s1831_s29 = int_to_ptr.vmem [resolvable:$true] %s215_s29 }
  0x43   : > { %s1494_s30 = scalar_lea.hbm %s1829_s13, %s1818_s22  ;;  %s1498_s9 = scalar_lea.hbm %s2111_s1, 3840 }
  0x44   : > { %p1495_p11 = scmp.ne.s32.totalorder %s1829_s13, %s1494_s30  ;;  %p1499_p6 = scmp.lt.u32.totalorder %s1829_s13, %s2111_s1 }
  0x45   : > { %p1500_p9 = scmp.lt.u32.totalorder %s1498_s9, %s1494_s30  ;;  %p1502_p12 = scmp.lt.u32.totalorder %s1494_s30, %s1829_s13 }
  0x46   : > { %p1496_p0 = pnand %p1495_p11, %p1134_p4 }
  0x47   : > { %p1501_p10 = por %p1500_p9, %p1499_p6 }
  0x48   : > { %p1497_p5 = pneg %p1496_p0 }
  0x49   : > { %p1503_p13 = por %p1502_p12, %p1501_p10 }
  0x4b   : > { %p1504_p1 = pnand %p1503_p13, %p1497_p5 }
  0x4d   : > { %1507 = shalt.err (!%p1504_p1)
}
  0x4e   : > { %s1508_s14 = scalar_lea.vmem %s1831_s29, %s1818_s22  ;;  %s1693_s15 = smov [#allocation4]  }
  0x4f   : > { %p1509_p2 = scmp.ne.s32.totalorder %s1831_s29, %s1508_s14  ;;  %s1512_s21 = sshll.u32 %s1693_s15, 4  ;;  %s1513_s21 = int_to_ptr.vmem [resolvable:$false] %s1512_s21 }
  0x50   : > { %s1514_s27 = scalar_lea.vmem %s1513_s21, 4096  ;;  %p1515_p11 = scmp.lt.s32.totalorder %s1831_s29, %s1513_s21 }
  0x51   : > { %p1510_p3 = pnand %p1509_p2, %p1134_p4  ;;  %p1516_p0 = scmp.lt.s32.totalorder %s1514_s27, %s1508_s14 }
  0x53   : > { %p1511_p8 = pneg %p1510_p3  ;;  %p1517_p6 = por %p1516_p0, %p1515_p11 }
  0x55   : > { %p1518_p9 = pnand %p1517_p6, %p1511_p8 }
  0x57   : > { %1521 = shalt.err (!%p1518_p9)
}
  0x58   : > { %s1694_s5 = smov 256   ;;  %s1695_s24 = smov 16  }
  0x59   : > { %221 = dma.hbm_to_vmem [thread:$0]  (%p1134_p4), %s1829_s13, %s1818_s22, %s1831_s29, %s1821_s28, %s1694_s5, %s1694_s5, %s1695_s24  }
  0x5a PF: > { %p1139_p5 = scmp.ge.s32.totalorder %s1624_s18, 1  ;;  %p223_p10 = scmp.lt.s32.totalorder %s1624_s18, 3 }
  0x5c   : > { %p224_p12 = pnand %p1139_p5, %p223_p10 }
  0x5d   : > { %s1861_s7 = sand.u32 (!%p224_p12), 1, %s1616_s16  }
  0x5e   : > { %227 = sbr.rel (%p224_p12) target bundleno = 486 (0x1e6), region = 32  ;;  %s1140_s12 = sshll.u32 (!%p224_p12), %s1861_s7, 7 }
  0x5f   : > { %s230_s30 = scalar_lea.sflag (!%p224_p12), [#allocation3], %s1861_s7  ;;  %s1865_s6 = scalar_lea.vmem (!%p224_p12), [#allocation2], %s1140_s12 }
  0x65   : > { %1603 = dma.done.wait (%p1761_p7), %s230_s30, 2048  }
  0x66   : > { %1605 = vsyncadd (%p1761_p7), %s230_s30, 4294965248  ;;  %s239_s18 = scalar_lea.sflag [#allocation5], %s1861_s7  ;;  %s1872_s22 = scalar_lea.vmem [#allocation4], %s1140_s12 }
  0x67   : > { %1607 = dma.done.wait (%p1761_p7), %s239_s18, 2048  }
  0x68   : > { %1609 = vsyncadd (%p1761_p7), %s239_s18, 4294965248  ;;  %v1450_v0 = vld [vmem:[%s2112_s2 + $0x40] sm:$0xff]   ;;  %v1452_v2 = vld [vmem:[%s2112_s2 + $0x48] sm:$0xff]   ;;  %s1142_s30 = sshll.u32 %s1861_s7, 6  ;;  %vm539_vm0 = vcmask 400384   ;;  %p2118_p7 = scmp.ne.s32.totalorder %s2117_s26, 0 }
  0x69   : > { %v1451_v1 = vld [vmem:[%s2112_s2] sm:$0xff]   ;;  %1204 = vmatprep.subr.bf16.mxu0 %v1450_v0  ;;  %1244 = vmatprep.subr.bf16.mxu1 %v1450_v0  ;;  %v1453_v3 = vld [vmem:[%s2112_s2 + $0x8] sm:$0xff]   ;;  %v1454_v4 = vld [vmem:[%s2112_s2 + $0x50] sm:$0xff]   ;;  %s1959_s18 = scalar_lea.vmem [#allocation6], %s1142_s30   ;;  %s1162_s7 = sshll.u32 (%p2118_p7), %s1740_s19, 3 }
  0x6a   : > { %1205 = vmatpush3.bf16.msra.mxu0 %v1451_v1  ;;  %1245 = vmatpush3.bf16.msra.mxu1 %v1451_v1  ;;  %v1455_v5 = vld [vmem:[%s2112_s2 + $0x10] sm:$0xff]   ;;  %v1456_v6 = vld [vmem:[%s2112_s2 + $0x58] sm:$0xff]   ;;  %v1458_v8 = vld [vmem:[%s2112_s2 + $0x60] sm:$0xff]   ;;  %s633_s28 = ssub.s32 (%p2118_p7), 15, %s1162_s7 }
  0x6b   : > { %1206 = vmatprep.subr.bf16.mxu0 %v1452_v2  ;;  %1246 = vmatprep.subr.bf16.mxu1 %v1452_v2  ;;  %v1457_v7 = vld [vmem:[%s2112_s2 + $0x18] sm:$0xff]   ;;  %v1459_v9 = vld [vmem:[%s2112_s2 + $0x20] sm:$0xff]   ;;  %v1460_v10 = vld [vmem:[%s2112_s2 + $0x68] sm:$0xff]   ;;  %p634_p4 = scmp.lt.s32.totalorder (%p2118_p7), %s633_s28, 8 }
  0x6c   : > { %v331_v11 = vld [vmem:[%s1865_s6 + $0x8] sm:$0xff]  ;;  %v333_v12 = vld [vmem:[%s1865_s6 + $0x18] sm:$0xff]  ;;  %v1462_v18 = vld [vmem:[%s2112_s2 + $0x70] sm:$0xff]  }
  0x6d   : > { %v355_v13 = vld [vmem:[%s1872_s22 + $0x8] sm:$0xff]  ;;  %v347_v14 = vpack.c.bf16 %v333_v12, %v331_v11  ;;  %v357_v15 = vld [vmem:[%s1872_s22 + $0x18] sm:$0xff]  ;;  %v1463_v19 = vld [vmem:[%s2112_s2 + $0x30] sm:$0xff]  }
  0x6e   : > { %1207 = vmatpush3.bf16.msra.mxu0 %v1453_v3  ;;  %1247 = vmatpush3.bf16.msra.mxu1 %v1453_v3  ;;  %v371_v16 = vpack.c.bf16 %v357_v15, %v355_v13  ;;  %v1461_v17 = vld [vmem:[%s2112_s2 + $0x28] sm:$0xff]   ;;  %v1464_v20 = vld [vmem:[%s2112_s2 + $0x78] sm:$0xff]   ;;  %v330_v22 = vld [vmem:[%s1865_s6] sm:$0xff] }
  0x6f   : > { %1208 = vmatprep.subr.bf16.mxu0 %v1454_v4  ;;  %1248 = vmatprep.subr.bf16.mxu1 %v1454_v4  ;;  %v1465_v21 = vld [vmem:[%s2112_s2 + $0x38] sm:$0xff]   ;;  %v332_v23 = vld [vmem:[%s1865_s6 + $0x10] sm:$0xff]  ;;  %v354_v24 = vld [vmem:[%s1872_s22] sm:$0xff] }
  0x70   : > { %506 = vmatprep.mubr.bf16.mxu0 %v347_v14  ;;  %580 = vmatprep.mubr.bf16.mxu1 %v371_v16  ;;  %v356_v25 = vld [vmem:[%s1872_s22 + $0x10] sm:$0xff]  ;;  %v335_v26 = vld [vmem:[%s1865_s6 + $0x28] sm:$0xff]  ;;  %v337_v27 = vld [vmem:[%s1865_s6 + $0x38] sm:$0xff]  ;;  %v346_v30 = vpack.c.bf16 %v332_v23, %v330_v22 }
  0x71   : > { %v359_v28 = vld [vmem:[%s1872_s22 + $0x28] sm:$0xff]  ;;  %v361_v29 = vld [vmem:[%s1872_s22 + $0x38] sm:$0xff]  ;;  %v370_v31 = vpack.c.bf16 %v356_v25, %v354_v24  ;;  %v349_v32 = vpack.c.bf16 %v337_v27, %v335_v26  ;;  %v334_v34 = vld [vmem:[%s1865_s6 + $0x20] sm:$0xff] }
  0x72   : > { %1209 = vmatpush3.bf16.msra.mxu0 %v1455_v5  ;;  %1249 = vmatpush3.bf16.msra.mxu1 %v1455_v5  ;;  %v373_v33 = vpack.c.bf16 %v361_v29, %v359_v28  ;;  %v336_v35 = vld [vmem:[%s1865_s6 + $0x30] sm:$0xff]  ;;  %v358_v36 = vld [vmem:[%s1872_s22 + $0x20] sm:$0xff]  ;;  %v339_v38 = vld [vmem:[%s1865_s6 + $0x48] sm:$0xff] }
  0x73   : > { %1210 = vmatprep.subr.bf16.mxu0 %v1456_v6  ;;  %1250 = vmatprep.subr.bf16.mxu1 %v1456_v6  ;;  %v360_v37 = vld [vmem:[%s1872_s22 + $0x30] sm:$0xff]  ;;  %v341_v39 = vld [vmem:[%s1865_s6 + $0x58] sm:$0xff]  ;;  %v363_v40 = vld [vmem:[%s1872_s22 + $0x48] sm:$0xff]  ;;  %v348_v42 = vpack.c.bf16 %v336_v35, %v334_v34 }
  0x74   : > { %v365_v41 = vld [vmem:[%s1872_s22 + $0x58] sm:$0xff]  ;;  %v372_v43 = vpack.c.bf16 %v360_v37, %v358_v36  ;;  %v351_v44 = vpack.c.bf16 %v341_v39, %v339_v38  ;;  %v338_v46 = vld [vmem:[%s1865_s6 + $0x40] sm:$0xff]  ;;  %v340_v47 = vld [vmem:[%s1865_s6 + $0x50] sm:$0xff] }
  0x75   : > { %v375_v45 = vpack.c.bf16 %v365_v41, %v363_v40  ;;  %v362_v48 = vld [vmem:[%s1872_s22 + $0x40] sm:$0xff]  ;;  %v364_v49 = vld [vmem:[%s1872_s22 + $0x50] sm:$0xff]  ;;  %v343_v50 = vld [vmem:[%s1865_s6 + $0x68] sm:$0xff]  ;;  %v350_v54 = vpack.c.bf16 %v340_v47, %v338_v46 }
  0x76   : > { %1211 = vmatpush3.bf16.msra.mxu0 %v1457_v7  ;;  %1251 = vmatpush3.bf16.msra.mxu1 %v1457_v7  ;;  %v345_v51 = vld [vmem:[%s1865_s6 + $0x78] sm:$0xff]  ;;  %v367_v52 = vld [vmem:[%s1872_s22 + $0x68] sm:$0xff]  ;;  %v374_v55 = vpack.c.bf16 %v364_v49, %v362_v48  ;;  %v342_v58 = vld [vmem:[%s1865_s6 + $0x60] sm:$0xff] }
  0x77   : > { %1212 = vmatprep.subr.bf16.mxu0 %v1458_v8  ;;  %1252 = vmatprep.subr.bf16.mxu1 %v1458_v8  ;;  %v369_v53 = vld [vmem:[%s1872_s22 + $0x78] sm:$0xff]  ;;  %v353_v56 = vpack.c.bf16 %v345_v51, %v343_v50  ;;  %v344_v59 = vld [vmem:[%s1865_s6 + $0x70] sm:$0xff]  ;;  %v366_v60 = vld [vmem:[%s1872_s22 + $0x60] sm:$0xff]  ;;  %s1963_s6 = scalar_lea.vmem [#allocation7], %s1142_s30  }
  0x78   : > { %v377_v57 = vpack.c.bf16 %v369_v53, %v367_v52  ;;  %v368_v61 = vld [vmem:[%s1872_s22 + $0x70] sm:$0xff]  ;;  %v352_v62 = vpack.c.bf16 %v344_v59, %v342_v58  ;;  %s1198_s22 = sshll.u32 (%p2118_p7), %s1740_s19, 6 }
  0x79   : > { %v376_v63 = vpack.c.bf16 %v368_v61, %v366_v60  ;;  %s2002_s8 = scalar_lea.vmem (%p2118_p7), %s2113_s3, %s1198_s22  }
  0x7a   : > { %1213 = vmatpush3.bf16.msra.mxu0 %v1459_v9  ;;  %1253 = vmatpush3.bf16.msra.mxu1 %v1459_v9 }
  0x7b   : > { %1214 = vmatprep.subr.bf16.mxu0 %v1460_v10  ;;  %1254 = vmatprep.subr.bf16.mxu1 %v1460_v10 }
  0x7e   : > { %1215 = vmatpush3.bf16.msra.mxu0 %v1461_v17  ;;  %1255 = vmatpush3.bf16.msra.mxu1 %v1461_v17 }
  0x7f   : > { %1216 = vmatprep.subr.bf16.mxu0 %v1462_v18  ;;  %1256 = vmatprep.subr.bf16.mxu1 %v1462_v18 }
  0x82   : > { %1217 = vmatpush3.bf16.msra.mxu0 %v1463_v19  ;;  %1257 = vmatpush3.bf16.msra.mxu1 %v1463_v19 }
  0x83   : > { %1218 = vmatprep.subr.bf16.mxu0 %v1464_v20  ;;  %1258 = vmatprep.subr.bf16.mxu1 %v1464_v20 }
  0x86   : > { %1219 = vmatpush3.bf16.msra.mxu0 %v1465_v21  ;;  %1259 = vmatpush3.bf16.msra.mxu1 %v1465_v21 }
  0x89   : > { %507 = vmatmul.mubr.bf16.vlgmr.msra.gmra.mrb[0].mxu0 %v346_v30  ;;  %581 = vmatmul.mubr.bf16.vlgmr.msra.gmra.mrb[0].mxu1 %v370_v31 }
  0x8a   : > { %514 = vmatprep.mubr.bf16.mxu0 %v349_v32  ;;  %588 = vmatprep.mubr.bf16.mxu1 %v373_v33 }
  0x91   : > { %515 = vmatmul.mubr.bf16.gmra.mrb[4].mxu0 %v348_v42  ;;  %589 = vmatmul.mubr.bf16.gmra.mrb[4].mxu1 %v372_v43 }
  0x92   : > { %522 = vmatprep.mubr.bf16.mxu0 %v351_v44  ;;  %596 = vmatprep.mubr.bf16.mxu1 %v375_v45 }
  0x99   : > { %523 = vmatmul.mubr.bf16.gmra.mrb[8].mxu0 %v350_v54  ;;  %597 = vmatmul.mubr.bf16.gmra.mrb[8].mxu1 %v374_v55 }
  0x9a   : > { %530 = vmatprep.mubr.bf16.mxu0 %v353_v56  ;;  %604 = vmatprep.mubr.bf16.mxu1 %v377_v57 }
  0xa1   : > { %531 = vmatmul.mubr.bf16.gmra.mrb[12].mxu0 %v352_v62  ;;  %605 = vmatmul.mubr.bf16.gmra.mrb[12].mxu1 %v376_v63 }
 0x15c   : > { %v1220_v0 = vpop.f32.mrb[0].mxu0  ;;  %v1260_v1 = vpop.f32.mrb[0].mxu1 }
 0x15d   : > { %v1221_v2 = vpop.f32.mrb[1].mxu0  ;;  %v1261_v3 = vpop.f32.mrb[1].mxu1 }
 0x15e   : > { %v1222_v4 = vadd.f32 %v1221_v2, %v1220_v0  ;;  %v1262_v5 = vadd.f32 %v1261_v3, %v1260_v1  ;;  %v1223_v6 = vpop.f32.mrb[2].mxu0  ;;  %v1263_v7 = vpop.f32.mrb[2].mxu1 }
 0x15f   : > { %v1224_v8 = vpop.f32.mrb[3].mxu0  ;;  %v1264_v9 = vpop.f32.mrb[3].mxu1 }
 0x160   : > { %540 = vst.msk [vmem:[%s1959_s18] sm:$0xff] %vm539_vm0, %v1222_v4  ;;  %613 = vst.msk [vmem:[%s1963_s6] sm:$0xff] %vm539_vm0, %v1262_v5  ;;  %v1225_v10 = vadd.f32 %v1224_v8, %v1223_v6  ;;  %v1265_v11 = vadd.f32 %v1264_v9, %v1263_v7 }
 0x162   : > { %541 = vst.msk [vmem:[%s1959_s18 + $0x8] sm:$0xff] %vm539_vm0, %v1225_v10  ;;  %614 = vst.msk [vmem:[%s1963_s6 + $0x8] sm:$0xff] %vm539_vm0, %v1265_v11 }
 0x164   : > { %v1226_v12 = vpop.f32.mrb[4].mxu0  ;;  %v1266_v13 = vpop.f32.mrb[4].mxu1 }
 0x165   : > { %v1227_v14 = vpop.f32.mrb[5].mxu0  ;;  %v1267_v15 = vpop.f32.mrb[5].mxu1 }
 0x166   : > { %v1228_v16 = vadd.f32 %v1227_v14, %v1226_v12  ;;  %v1268_v17 = vadd.f32 %v1267_v15, %v1266_v13  ;;  %v1229_v18 = vpop.f32.mrb[6].mxu0  ;;  %v1269_v19 = vpop.f32.mrb[6].mxu1 }
 0x167   : > { %v1230_v20 = vpop.f32.mrb[7].mxu0  ;;  %v1270_v21 = vpop.f32.mrb[7].mxu1 }
 0x168   : > { %542 = vst.msk [vmem:[%s1959_s18 + $0x10] sm:$0xff] %vm539_vm0, %v1228_v16  ;;  %615 = vst.msk [vmem:[%s1963_s6 + $0x10] sm:$0xff] %vm539_vm0, %v1268_v17  ;;  %v1231_v22 = vadd.f32 %v1230_v20, %v1229_v18  ;;  %v1271_v23 = vadd.f32 %v1270_v21, %v1269_v19 }
 0x16a   : > { %543 = vst.msk [vmem:[%s1959_s18 + $0x18] sm:$0xff] %vm539_vm0, %v1231_v22  ;;  %616 = vst.msk [vmem:[%s1963_s6 + $0x18] sm:$0xff] %vm539_vm0, %v1271_v23 }
 0x16c   : > { %v1232_v24 = vpop.f32.mrb[8].mxu0  ;;  %v1272_v25 = vpop.f32.mrb[8].mxu1 }
 0x16d   : > { %v1233_v26 = vpop.f32.mrb[9].mxu0  ;;  %v1273_v27 = vpop.f32.mrb[9].mxu1 }
 0x16e   : > { %v1234_v28 = vadd.f32 %v1233_v26, %v1232_v24  ;;  %v1274_v29 = vadd.f32 %v1273_v27, %v1272_v25  ;;  %v1235_v30 = vpop.f32.mrb[10].mxu0  ;;  %v1275_v31 = vpop.f32.mrb[10].mxu1 }
 0x16f   : > { %v1236_v32 = vpop.f32.mrb[11].mxu0  ;;  %v1276_v33 = vpop.f32.mrb[11].mxu1 }
 0x170   : > { %544 = vst.msk [vmem:[%s1959_s18 + $0x20] sm:$0xff] %vm539_vm0, %v1234_v28  ;;  %617 = vst.msk [vmem:[%s1963_s6 + $0x20] sm:$0xff] %vm539_vm0, %v1274_v29  ;;  %v1237_v34 = vadd.f32 %v1236_v32, %v1235_v30  ;;  %v1277_v35 = vadd.f32 %v1276_v33, %v1275_v31 }
 0x172   : > { %545 = vst.msk [vmem:[%s1959_s18 + $0x28] sm:$0xff] %vm539_vm0, %v1237_v34  ;;  %618 = vst.msk [vmem:[%s1963_s6 + $0x28] sm:$0xff] %vm539_vm0, %v1277_v35 }
 0x174   : > { %v1238_v36 = vpop.f32.mrb[12].mxu0  ;;  %v1278_v37 = vpop.f32.mrb[12].mxu1  ;;  %631 = sbr.rel (!%p2118_p7) target bundleno = 428 (0x1ac), region = 44 }
 0x175   : > { %v1239_v38 = vpop.f32.mrb[13].mxu0  ;;  %v1279_v39 = vpop.f32.mrb[13].mxu1 }
 0x176   : > { %v1240_v40 = vadd.f32 %v1239_v38, %v1238_v36  ;;  %v1280_v41 = vadd.f32 %v1279_v39, %v1278_v37  ;;  %v1241_v42 = vpop.f32.mrb[14].mxu0  ;;  %v1281_v43 = vpop.f32.mrb[14].mxu1 }
 0x177   : > { %v1242_v44 = vpop.f32.mrb[15].mxu0  ;;  %v1282_v45 = vpop.f32.mrb[15].mxu1 }
 0x178   : > { %546 = vst.msk [vmem:[%s1959_s18 + $0x30] sm:$0xff] %vm539_vm0, %v1240_v40  ;;  %619 = vst.msk [vmem:[%s1963_s6 + $0x30] sm:$0xff] %vm539_vm0, %v1280_v41  ;;  %v1243_v46 = vadd.f32 %v1242_v44, %v1241_v42  ;;  %v1283_v47 = vadd.f32 %v1282_v45, %v1281_v43 }
 0x17a   : > { %547 = vst.msk [vmem:[%s1959_s18 + $0x38] sm:$0xff] %vm539_vm0, %v1243_v46  ;;  %620 = vst.msk [vmem:[%s1963_s6 + $0x38] sm:$0xff] %vm539_vm0, %v1283_v47 }
 0x17b   : > { %s2135_s28 = smov (!%p634_p4, %s633_s28), 8 }
 0x17c   : > { %s1163_s9 = sshll.u32 %s2135_s28, 7 }
 0x17d   : > { %p1166_p13 = scmp.eq.s32.totalorder %s1163_s9, 0 }
 0x17e   : > { %s2008_s10 = sshrl.u32 (!%p1166_p13), %s2135_s28, 3 }
 0x17f   : > { %642 = sbr.rel (%p1166_p13) target bundleno = 428 (0x1ac), region = 48  ;;  %p1167_p1 = scmp.le.s32.totalorder (!%p1166_p13), %s2008_s10, 0 }
 0x186   : > { %1025 = sbr.rel (%p1167_p1) target bundleno = 407 (0x197), region = 211  ;;  %s2119_s11 = smov (!%p1167_p1), %s2002_s8 }
 0x187   : > { %s2120_s14 = smov (!%p1167_p1), %s1959_s18  ;;  %s2017_s25 = smov (!%p1167_p1), 0  }
 0x188   : > { %s2019_s15 = smov (!%p1167_p1), 0  }
 0x18d LB: >> { %v718_v48 = vld [vmem:[%s1632_s14] sm:$0xff]  ;;  %v720_v49 = vld [vmem:[%s1632_s14 + $0x8] sm:$0xff]  ;;  %v722_v50 = vld [vmem:[%s1632_s14 + $0x10] sm:$0xff]  ;;  %s734_s21 = sadd.s32 1, %s1636_s25  ;;  %s712_s15 = sadd.s32 1, %s1640_s15   ;;  %s1640_s15 = sphi %s2019_s15, %s712_s15   ;;  %s1636_s25 = sphi %s2017_s25, %s2121_s25   ;;  %s1632_s14 = sphi %s2120_s14, %s739_s14   ;;  %s1628_s11 = sphi %s2119_s11, %s740_s11  }
 0x18e   : >> { %719 = vst [vmem:[%s1628_s11] sm:$0xff] %v718_v48  ;;  %721 = vst [vmem:[%s1628_s11 + $0x8] sm:$0xff] %v720_v49  ;;  %v724_v51 = vld [vmem:[%s1632_s14 + $0x18] sm:$0xff]  ;;  %v726_v52 = vld [vmem:[%s1632_s14 + $0x20] sm:$0xff]  ;;  %p735_p2 = scmp.ge.s32.totalorder %s734_s21, %s2008_s10  ;;  %p711_p3 = scmp.ge.s32.totalorder %s712_s15, %s2008_s10 }
 0x18f   : >> { %723 = vst [vmem:[%s1628_s11 + $0x10] sm:$0xff] %v722_v50  ;;  %v728_v53 = vld [vmem:[%s1632_s14 + $0x28] sm:$0xff]  ;;  %725 = vst [vmem:[%s1628_s11 + $0x18] sm:$0xff] %v724_v51  ;;  %v730_v54 = vld [vmem:[%s1632_s14 + $0x30] sm:$0xff] }
 0x190   : >> { %727 = vst [vmem:[%s1628_s11 + $0x20] sm:$0xff] %v726_v52  ;;  %729 = vst [vmem:[%s1628_s11 + $0x28] sm:$0xff] %v728_v53  ;;  %v732_v55 = vld [vmem:[%s1632_s14 + $0x38] sm:$0xff]  ;;  %s2137_s21 = smov (%p735_p2, %s734_s21), 0  ;;  %714 = sbr.rel (!%p711_p3) target bundleno = 397 (0x18d), region = 217 }
 0x191   : >> { %731 = vst [vmem:[%s1628_s11 + $0x30] sm:$0xff] %v730_v54  ;;  %733 = vst [vmem:[%s1628_s11 + $0x38] sm:$0xff] %v732_v55  ;;  %s1168_s27 = sshll.u32 %s2137_s21, 6  ;;  %s2121_s25 = smov %s2137_s21 }
 0x192   : >> { %s739_s14 = scalar_lea.vmem %s1959_s18, %s1168_s27 [#allocation6]   ;;  %s740_s11 = scalar_lea.vmem %s2002_s8, %s1168_s27  }
 0x197 PF: > { %s2038_s5 = sand.u32 7, %s2135_s28   ;;  %s1199_s24 = sshll.u32 %s2008_s10, 6 }
 0x198   : > { %s745_s12 = scalar_lea.vmem %s1959_s18, %s1199_s24 [#allocation6]   ;;  %s747_s30 = scalar_lea.vmem %s2002_s8, %s1199_s24  }
 0x199   : > { %p1173_p8 = scmp.le.s32.totalorder %s2038_s5, 0 }
 0x19a   : > { %s1642_s7 = smov (!%p1173_p8), %s747_s30   ;;  %s1646_s22 = smov (!%p1173_p8), %s745_s12  }
 0x19b   : > { %1039 = sbr.rel (%p1173_p8) target bundleno = 428 (0x1ac), region = 222  ;;  %s1650_s13 = smov (!%p1173_p8), 0  }
 0x19c   : > { %s1654_s29 = smov (!%p1173_p8), 0  }
 0x1a2 LB: >> { %v757_v56 = vld [vmem:[%s1648_s22] sm:$0xff]  ;;  %s759_s28 = sadd.s32 1, %s1652_s13  ;;  %s751_s29 = sadd.s32 1, %s1656_s29   ;;  %s1656_s29 = sphi %s1654_s29, %s751_s29   ;;  %s1652_s13 = sphi %s1650_s13, %s1651_s13   ;;  %s1648_s22 = sphi %s1646_s22, %s764_s22   ;;  %s1644_s7 = sphi %s1642_s7, %s765_s7  }
 0x1a3   : >> { %758 = vst [vmem:[%s1644_s7] sm:$0xff] %v757_v56  ;;  %p760_p11 = scmp.ge.s32.totalorder %s759_s28, %s2038_s5  ;;  %p750_p0 = scmp.ge.s32.totalorder %s751_s29, %s2038_s5 }
 0x1a5   : >> { %s2139_s28 = smov (%p760_p11, %s759_s28), 0  ;;  %753 = sbr.rel (!%p750_p0) target bundleno = 418 (0x1a2), region = 228 }
 0x1a6   : >> { %s1174_s18 = sshll.u32 %s2139_s28, 3  ;;  %s1651_s13 = smov %s2139_s28  }
 0x1a7   : >> { %s764_s22 = scalar_lea.vmem %s745_s12, %s1174_s18 [#allocation6]   ;;  %s765_s7 = scalar_lea.vmem %s747_s30, %s1174_s18  }
 0x1ac PF: > { %p2122_p6 = scmp.ne.s32.totalorder %s2117_s26, 0 }
 0x1ad   : > { %s1176_s8 = sshll.u32 (%p2122_p6), %s1740_s19, 3  ;;  %s1201_s9 = sshll.u32 (%p2122_p6), %s1740_s19, 6 }
 0x1ae   : > { %771 = sbr.rel (!%p2122_p6) target bundleno = 486 (0x1e6), region = 96  ;;  %s773_s10 = ssub.s32 (%p2122_p6), 15, %s1176_s8 }
 0x1af   : > { %s2053_s25 = scalar_lea.vmem (%p2122_p6), %s2114_s4, %s1201_s9   ;;  %p774_p9 = scmp.lt.s32.totalorder (%p2122_p6), %s773_s10, 8 }
 0x1b5   : > { %s2141_s10 = smov (!%p774_p9, %s773_s10), 8 }
 0x1b6   : > { %s1177_s15 = sshll.u32 %s2141_s10, 7 }
 0x1b7   : > { %p1180_p5 = scmp.eq.s32.totalorder %s1177_s15, 0 }
 0x1b8   : > { %s2059_s26 = sshrl.u32 (!%p1180_p5), %s2141_s10, 3 }
 0x1b9   : > { %782 = sbr.rel (%p1180_p5) target bundleno = 486 (0x1e6), region = 100  ;;  %p1181_p10 = scmp.le.s32.totalorder (!%p1180_p5), %s2059_s26, 0 }
 0x1c0   : > { %1053 = sbr.rel (%p1181_p10) target bundleno = 465 (0x1d1), region = 233  ;;  %s2123_s19 = smov (!%p1181_p10), %s2053_s25 }
 0x1c1   : > { %s2124_s21 = smov (!%p1181_p10), %s1963_s6  ;;  %s2068_s27 = smov (!%p1181_p10), 0  }
 0x1c2   : > { %s2070_s5 = smov (!%p1181_p10), 0  }
 0x1c7 LB: >> { %v858_v57 = vld [vmem:[%s1664_s21] sm:$0xff]  ;;  %v860_v58 = vld [vmem:[%s1664_s21 + $0x8] sm:$0xff]  ;;  %v862_v59 = vld [vmem:[%s1664_s21 + $0x10] sm:$0xff]  ;;  %s874_s24 = sadd.s32 1, %s1668_s27  ;;  %s852_s5 = sadd.s32 1, %s1672_s5   ;;  %s1672_s5 = sphi %s2070_s5, %s852_s5   ;;  %s1668_s27 = sphi %s2068_s27, %s2125_s27   ;;  %s1664_s21 = sphi %s2124_s21, %s879_s21   ;;  %s1660_s19 = sphi %s2123_s19, %s880_s19  }
 0x1c8   : >> { %859 = vst [vmem:[%s1660_s19] sm:$0xff] %v858_v57  ;;  %861 = vst [vmem:[%s1660_s19 + $0x8] sm:$0xff] %v860_v58  ;;  %v864_v60 = vld [vmem:[%s1664_s21 + $0x18] sm:$0xff]  ;;  %v866_v61 = vld [vmem:[%s1664_s21 + $0x20] sm:$0xff]  ;;  %p875_p12 = scmp.ge.s32.totalorder %s874_s24, %s2059_s26  ;;  %p851_p7 = scmp.ge.s32.totalorder %s852_s5, %s2059_s26 }
 0x1c9   : >> { %863 = vst [vmem:[%s1660_s19 + $0x10] sm:$0xff] %v862_v59  ;;  %v868_v62 = vld [vmem:[%s1664_s21 + $0x28] sm:$0xff]  ;;  %865 = vst [vmem:[%s1660_s19 + $0x18] sm:$0xff] %v864_v60  ;;  %v870_v63 = vld [vmem:[%s1664_s21 + $0x30] sm:$0xff] }
 0x1ca   : >> { %867 = vst [vmem:[%s1660_s19 + $0x20] sm:$0xff] %v866_v61  ;;  %869 = vst [vmem:[%s1660_s19 + $0x28] sm:$0xff] %v868_v62  ;;  %v872_v0 = vld [vmem:[%s1664_s21 + $0x38] sm:$0xff]  ;;  %s2143_s24 = smov (%p875_p12, %s874_s24), 0  ;;  %854 = sbr.rel (!%p851_p7) target bundleno = 455 (0x1c7), region = 239 }
 0x1cb   : >> { %871 = vst [vmem:[%s1660_s19 + $0x30] sm:$0xff] %v870_v63  ;;  %873 = vst [vmem:[%s1660_s19 + $0x38] sm:$0xff] %v872_v0  ;;  %s1182_s12 = sshll.u32 %s2143_s24, 6  ;;  %s2125_s27 = smov %s2143_s24 }
 0x1cc   : >> { %s879_s21 = scalar_lea.vmem %s1963_s6, %s1182_s12 [#allocation7]   ;;  %s880_s19 = scalar_lea.vmem %s2053_s25, %s1182_s12  }
 0x1d1 PF: > { %s2089_s30 = sand.u32 7, %s2141_s10   ;;  %s1202_s7 = sshll.u32 %s2059_s26, 6 }
 0x1d2   : > { %s885_s22 = scalar_lea.vmem %s1963_s6, %s1202_s7 [#allocation7]   ;;  %s887_s13 = scalar_lea.vmem %s2053_s25, %s1202_s7  }
 0x1d3   : > { %p1187_p4 = scmp.le.s32.totalorder %s2089_s30, 0 }
 0x1d4   : > { %s1674_s29 = smov (!%p1187_p4), %s887_s13   ;;  %s1678_s28 = smov (!%p1187_p4), %s885_s22  }
 0x1d5   : > { %1067 = sbr.rel (%p1187_p4) target bundleno = 486 (0x1e6), region = 244  ;;  %s1682_s18 = smov (!%p1187_p4), 0  }
 0x1d6   : > { %s1686_s8 = smov (!%p1187_p4), 0  }
 0x1dc LB: >> { %v897_v1 = vld [vmem:[%s1680_s28] sm:$0xff]  ;;  %s899_s9 = sadd.s32 1, %s1684_s18  ;;  %s891_s8 = sadd.s32 1, %s1688_s8   ;;  %s1688_s8 = sphi %s1686_s8, %s891_s8   ;;  %s1684_s18 = sphi %s1682_s18, %s1683_s18   ;;  %s1680_s28 = sphi %s1678_s28, %s904_s28   ;;  %s1676_s29 = sphi %s1674_s29, %s905_s29  }
 0x1dd   : >> { %898 = vst [vmem:[%s1676_s29] sm:$0xff] %v897_v1  ;;  %p900_p13 = scmp.ge.s32.totalorder %s899_s9, %s2089_s30  ;;  %p890_p1 = scmp.ge.s32.totalorder %s891_s8, %s2089_s30 }
 0x1df   : >> { %s2145_s9 = smov (%p900_p13, %s899_s9), 0  ;;  %893 = sbr.rel (!%p890_p1) target bundleno = 476 (0x1dc), region = 250 }
 0x1e0   : >> { %s1188_s6 = sshll.u32 %s2145_s9, 3  ;;  %s1683_s18 = smov %s2145_s9  }
 0x1e1   : >> { %s904_s28 = scalar_lea.vmem %s885_s22, %s1188_s6 [#allocation7]   ;;  %s905_s29 = scalar_lea.vmem %s887_s13, %s1188_s6  }
 0x1e6 PF: > { %p18_p2 = scmp.ge.s32.totalorder %s1743_s20, 4   ;;  %s2126_s15 = smov %s1616_s16 }
 0x1e7   : > { %s2127_s16 = smov %s1620_s17  ;;  %s2128_s17 = smov %s1753_s23 }
 0x1e8   : > { %s2129_s18 = smov %s1743_s20  ;;  %20 = sbr.rel (!%p18_p2) target bundleno = 5 (0x5), region = 261 }
 0x1ef   :  { %928 = vsyncpa [#allocation3], 1 }
 0x1f0   :  { %930 = vsyncpa [#allocation3 + $0x1], 1 }
 0x1f1   :  { %931 = vsyncpa [#allocation5], 1 }
 0x1f2   :  { %933 = vsyncpa [#allocation5 + $0x1], 1 }

</bundles_post_ra>
